<compile_context>
chip_gen: v7x
topology: tpu7x:2x2x1
jax: 0.10.0
libtpu: 0.0.40
codegen_flags: <defaults>
</compile_context>

<pallas_src>
import jax
import jax.numpy as jnp
from jax.experimental import pallas as pl
from jax.experimental.pallas import tpu as pltpu


def _round_up8(n):
    return -(-n // 8) * 8


def _head_layout(D, H):
    """Row layout of the packed head buffer: [W1 | b1 | W2 | b2] (8-aligned groups)."""
    r1 = _round_up8(max(D, 1))
    b1_row = r1
    w2_row = r1 + 8
    b2_row = w2_row + _round_up8(H)
    rows = b2_row + 8
    return b1_row, w2_row, b2_row, rows


def _tail_layout(H):
    """Row layout of a packed tail buffer: [W | b] (8-aligned groups)."""
    b_row = _round_up8(H)
    rows = b_row + 8
    return b_row, rows


def _mlp_kernel(t_ref, x_ref, head_ref, tail3_ref, tail4_ref, out_ref, h_scr):
    # t_ref (scalar prefetch) is consumed only by the BlockSpec index_maps.
    del t_ref
    D = x_ref.shape[1]
    H = head_ref.shape[1]
    b1_row, w2_row, b2_row, _ = _head_layout(D, H)
    b3_row, _ = _tail_layout(H)

    # Shared head runs once (grid step 0); result persists in VMEM scratch.
    @pl.when(pl.program_id(0) == 0)
    def _():
        x = x_ref[...]
        h = jnp.dot(x, head_ref[0:D, :], preferred_element_type=jnp.float32)
        h = jnp.maximum(h + head_ref[b1_row:b1_row + 1, :], 0.0)
        h = jnp.dot(h, head_ref[w2_row:w2_row + H, :],
                    preferred_element_type=jnp.float32)
        h_scr[...] = jnp.maximum(h + head_ref[b2_row:b2_row + 1, :], 0.0)

    # Per-tail layers; tail tile is selected by the index_map via prefetched t.
    h = h_scr[...]
    h = jnp.dot(h, tail3_ref[0:H, :], preferred_element_type=jnp.float32)
    h = jnp.maximum(h + tail3_ref[b3_row:b3_row + 1, :], 0.0)
    out = jnp.dot(h, tail4_ref[0:H, :], preferred_element_type=jnp.float32)
    out = out + tail4_ref[b3_row:b3_row + 1, :]
    # torch.chunk(out, 2, dim=1) -> (mu, logv); std = exp(0.5 * logv).
    d = out.shape[-1] // 2
    col = jax.lax.broadcasted_iota(jnp.int32, out.shape, 1)
    out_ref[...] = jnp.where(col < d, out, jnp.exp(0.5 * out))


def init_params(key, N=40, data_dim=2, hidden_dim=64):
    """Deterministic parameter init (uniform, PyTorch-Linear-style ranges)."""
    ks = jax.random.split(key, 4)

    def lin(k, fan_in, fan_out):
        kw, kb = jax.random.split(k)
        bound = 1.0 / jnp.sqrt(fan_in)
        w = jax.random.uniform(kw, (fan_in, fan_out), jnp.float32, -bound, bound)
        b = jax.random.uniform(kb, (1, fan_out), jnp.float32, -bound, bound)
        return w, b

    def tail_lin(k, fan_in, fan_out):
        kw, kb = jax.random.split(k)
        bound = 1.0 / jnp.sqrt(fan_in)
        w = jax.random.uniform(kw, (N, fan_in, fan_out), jnp.float32, -bound, bound)
        b = jax.random.uniform(kb, (N, 1, fan_out), jnp.float32, -bound, bound)
        return w, b

    w1, b1 = lin(ks[0], data_dim, hidden_dim)
    w2, b2 = lin(ks[1], hidden_dim, hidden_dim)
    w3, b3 = tail_lin(ks[2], hidden_dim, hidden_dim)
    w4, b4 = tail_lin(ks[3], hidden_dim, data_dim * 2)
    return dict(w1=w1, b1=b1, w2=w2, b2=b2, w3=w3, b3=b3, w4=w4, b4=b4)


def pack_params(params):
    """Fold each Linear's bias into one HBM buffer with its weight:
    (W; b) rows, padded to sublane multiples of 8 -> 3 weight buffers total."""
    w1, b1 = params["w1"], params["b1"]
    w2, b2 = params["w2"], params["b2"]
    w3, b3 = params["w3"], params["b3"]
    w4, b4 = params["w4"], params["b4"]
    D, H = w1.shape
    N = w3.shape[0]
    out_dim = w4.shape[-1]

    b1_row, w2_row, b2_row, head_rows = _head_layout(D, H)
    head = jnp.zeros((head_rows, H), jnp.float32)
    head = head.at[0:D, :].set(w1)
    head = head.at[b1_row, :].set(b1[0])
    head = head.at[w2_row:w2_row + H, :].set(w2)
    head = head.at[b2_row, :].set(b2[0])

    b_row, tail_rows = _tail_layout(H)
    t3 = jnp.zeros((N, tail_rows, H), jnp.float32)
    t3 = t3.at[:, 0:H, :].set(w3)
    t3 = t3.at[:, b_row, :].set(b3[:, 0, :])

    t4 = jnp.zeros((N, tail_rows, out_dim), jnp.float32)
    t4 = t4.at[:, 0:H, :].set(w4)
    t4 = t4.at[:, b_row, :].set(b4[:, 0, :])
    return dict(head=head, tail3=t3, tail4=t4)


def _mlp_pallas(packed, x, t_idx):
    """Run the MLP for every tail index in t_idx (int32, shape (T,)) in ONE call."""
    head, t3, t4 = packed["head"], packed["tail3"], packed["tail4"]
    B, D = x.shape
    H = head.shape[1]
    out_dim = t4.shape[-1]
    T = int(t_idx.shape[0])

    grid_spec = pltpu.PrefetchScalarGridSpec(
        num_scalar_prefetch=1,
        grid=(T,),
        in_specs=[
            # x and head weights: constant block index -> VMEM-resident, one DMA.
            pl.BlockSpec((B, D), lambda i, t: (0, 0)),
            pl.BlockSpec(head.shape, lambda i, t: (0, 0)),
            # Stacked tail buffers: tile for tail t[i] selected per grid step.
            pl.BlockSpec((None,) + t3.shape[1:], lambda i, t: (t[i], 0, 0)),
            pl.BlockSpec((None,) + t4.shape[1:], lambda i, t: (t[i], 0, 0)),
        ],
        out_specs=pl.BlockSpec((None, B, out_dim), lambda i, t: (i, 0, 0)),
        scratch_shapes=[pltpu.VMEM((B, H), jnp.float32)],
    )
    return pl.pallas_call(
        _mlp_kernel,
        out_shape=jax.ShapeDtypeStruct((T, B, out_dim), jnp.float32),
        grid_spec=grid_spec,
        compiler_params=pltpu.CompilerParams(
            dimension_semantics=("arbitrary",)),
    )(t_idx, x, head, t3, t4)


def mlp_forward(packed, x, t):
    """Spec semantics: forward(x, t) -> (mu, std) for a single tail t.
    t may be a Python int or a runtime scalar (no re-trace per tail)."""
    t_arr = jnp.asarray(t, jnp.int32).reshape((1,))
    out = _mlp_pallas(packed, x, t_arr)[0]
    d = out.shape[-1] // 2
    return out[:, :d], out[:, d:]


def mlp_forward_all_tails(packed, x):
    """Amortized path: all N tails in one pallas_call (head computed once)."""
    N = packed["tail3"].shape[0]
    out = _mlp_pallas(packed, x, jnp.arange(N, dtype=jnp.int32))
    d = out.shape[-1] // 2
    return out[..., :d], out[..., d:]


def mlp_reference(params, x, t):
    relu = lambda a: jnp.maximum(a, 0.0)
    h = relu(x @ params["w1"] + params["b1"])
    h = relu(h @ params["w2"] + params["b2"])
    h = relu(h @ params["w3"][t] + params["b3"][t])
    out = h @ params["w4"][t] + params["b4"][t]
    d = out.shape[-1] // 2
    return out[:, :d], jnp.exp(0.5 * out[:, d:])


if __name__ == "__main__":
    key = jax.random.PRNGKey(0)
    kp, kx = jax.random.split(key)

    N, data_dim, hidden_dim = 40, 2, 64
    B = 8
    t = 3  # tail index (runtime scalar; other t values reuse the same compile)

    params = init_params(kp, N=N, data_dim=data_dim, hidden_dim=hidden_dim)
    packed = pack_params(params)
    x = jax.random.normal(kx, (B, data_dim), jnp.float32)

    # Spec semantics: single tail t.
    mu, std = mlp_forward(packed, x, t)
    jax.block_until_ready((mu, std))
    mu_ref, std_ref = mlp_reference(params, x, t)
    assert jnp.allclose(mu, mu_ref, atol=1e-5, rtol=1e-5)
    assert jnp.allclose(std, std_ref, atol=1e-5, rtol=1e-5)

    # Amortized path: all N tails in one launch (head computed once, tail
    # weight DMAs pipelined across the grid).
    mu_all, std_all = mlp_forward_all_tails(packed, x)
    jax.block_until_ready((mu_all, std_all))
    for tt in (0, 7, N - 1):
        mr, sr = mlp_reference(params, x, tt)
        assert jnp.allclose(mu_all[tt], mr, atol=1e-5, rtol=1e-5)
        assert jnp.allclose(std_all[tt], sr, atol=1e-5, rtol=1e-5)

    print("KERNEL_OK")
</pallas_src>

<mosaic_0001>
module attributes {stable_mosaic.version = 11 : i64} {
  func.func @_mlp_kernel(%arg0: i32, %arg1: memref<1xi32, #tpu.memory_space<smem>>, %arg2: memref<8x2xf32, #tpu.memory_space<vmem>>, %arg3: memref<88x64xf32, #tpu.memory_space<vmem>>, %arg4: memref<1x72x64xf32, #tpu.memory_space<vmem>>, %arg5: memref<1x72x4xf32, #tpu.memory_space<vmem>>, %arg6: memref<1x8x4xf32, #tpu.memory_space<vmem>>, %arg7: memref<8x64xf32, #tpu.memory_space<vmem>>) attributes {dimension_semantics = [#tpu.dimension_semantics<arbitrary>], iteration_bounds = array<i64: 1>, scalar_prefetch = 1 : i64, scratch_operands = 1 : i64, tpu.core_type = #tpu.core_type<tc>, window_params = [{pipeline_mode = #tpu.pipeline_mode<synchronous>, transform_indices = @transform_0, window_bounds = array<i64: 8, 2>}, {pipeline_mode = #tpu.pipeline_mode<synchronous>, transform_indices = @transform_1, window_bounds = array<i64: 88, 64>}, {transform_indices = @transform_2, window_bounds = array<i64: 1, 72, 64>}, {transform_indices = @transform_3, window_bounds = array<i64: 1, 72, 4>}, {transform_indices = @transform_4, window_bounds = array<i64: 1, 8, 4>}]} {
    %c0_i32 = arith.constant 0 : i32
    %0 = arith.cmpi eq, %arg0, %c0_i32 : i32
    %1 = arith.extui %0 : i1 to i32
    %c0_i32_0 = arith.constant 0 : i32
    %2 = arith.cmpi ne, %1, %c0_i32_0 : i32
    scf.if %2 {
      %c0_19 = arith.constant 0 : index
      %c0_20 = arith.constant 0 : index
      %30 = vector.load %arg2[%c0_19, %c0_20] : memref<8x2xf32, #tpu.memory_space<vmem>>, vector<8x2xf32>
      %c0_21 = arith.constant 0 : index
      %c0_22 = arith.constant 0 : index
      %31 = vector.load %arg3[%c0_21, %c0_22] : memref<88x64xf32, #tpu.memory_space<vmem>>, vector<2x64xf32>
      %cst_23 = arith.constant dense<0.000000e+00> : vector<8x64xf32>
      %32 = tpu.matmul %30, %31, %cst_23 {dimension_numbers = #tpu.dot_dimension_numbers<[1], [0], [0], [1], [0, 0, 1, 1], [], []>} : vector<8x2xf32>, vector<2x64xf32>, vector<8x64xf32> -> vector<8x64xf32>
      %c8 = arith.constant 8 : index
      %c0_24 = arith.constant 0 : index
      %33 = vector.load %arg3[%c8, %c0_24] : memref<88x64xf32, #tpu.memory_space<vmem>>, vector<1x64xf32>
      %34 = vector.broadcast %33 : vector<1x64xf32> to vector<8x64xf32>
      %35 = arith.addf %32, %34 : vector<8x64xf32>
      %cst_25 = arith.constant 0.000000e+00 : f32
      %36 = vector.broadcast %cst_25 : f32 to vector<8x64xf32>
      %37 = arith.maximumf %35, %36 : vector<8x64xf32>
      %c16 = arith.constant 16 : index
      %c0_26 = arith.constant 0 : index
      %38 = vector.load %arg3[%c16, %c0_26] : memref<88x64xf32, #tpu.memory_space<vmem>>, vector<64x64xf32>
      %cst_27 = arith.constant dense<0.000000e+00> : vector<8x64xf32>
      %39 = tpu.matmul %37, %38, %cst_27 {dimension_numbers = #tpu.dot_dimension_numbers<[1], [0], [0], [1], [0, 0, 1, 1], [], []>} : vector<8x64xf32>, vector<64x64xf32>, vector<8x64xf32> -> vector<8x64xf32>
      %c80 = arith.constant 80 : index
      %c0_28 = arith.constant 0 : index
      %40 = vector.load %arg3[%c80, %c0_28] : memref<88x64xf32, #tpu.memory_space<vmem>>, vector<1x64xf32>
      %41 = vector.broadcast %40 : vector<1x64xf32> to vector<8x64xf32>
      %42 = arith.addf %39, %41 : vector<8x64xf32>
      %cst_29 = arith.constant 0.000000e+00 : f32
      %43 = vector.broadcast %cst_29 : f32 to vector<8x64xf32>
      %44 = arith.maximumf %42, %43 : vector<8x64xf32>
      %c0_30 = arith.constant 0 : index
      %c0_31 = arith.constant 0 : index
      %45 = vector.load %arg7[%c0_30, %c0_31] : memref<8x64xf32, #tpu.memory_space<vmem>>, vector<8x64xf32>
      tpu.vector_store %arg7[%c0_30, %c0_31], %44 {strides = array<i32>} : memref<8x64xf32, #tpu.memory_space<vmem>>, vector<8x64xf32>,
    } else {
    }
    %c0 = arith.constant 0 : index
    %c0_1 = arith.constant 0 : index
    %3 = vector.load %arg7[%c0, %c0_1] : memref<8x64xf32, #tpu.memory_space<vmem>>, vector<8x64xf32>
    %c0_2 = arith.constant 0 : index
    %c0_3 = arith.constant 0 : index
    %c0_4 = arith.constant 0 : index
    %4 = vector.load %arg4[%c0_2, %c0_3, %c0_4] : memref<1x72x64xf32, #tpu.memory_space<vmem>>, vector<1x64x64xf32>
    %5 = vector.shape_cast %4 : vector<1x64x64xf32> to vector<64x64xf32>
    %cst = arith.constant dense<0.000000e+00> : vector<8x64xf32>
    %6 = tpu.matmul %3, %5, %cst {dimension_numbers = #tpu.dot_dimension_numbers<[1], [0], [0], [1], [0, 0, 1, 1], [], []>} : vector<8x64xf32>, vector<64x64xf32>, vector<8x64xf32> -> vector<8x64xf32>
    %c0_5 = arith.constant 0 : index
    %c64 = arith.constant 64 : index
    %c0_6 = arith.constant 0 : index
    %7 = vector.load %arg4[%c0_5, %c64, %c0_6] : memref<1x72x64xf32, #tpu.memory_space<vmem>>, vector<1x1x64xf32>
    %8 = vector.shape_cast %7 : vector<1x1x64xf32> to vector<1x64xf32>
    %9 = vector.broadcast %8 : vector<1x64xf32> to vector<8x64xf32>
    %10 = arith.addf %6, %9 : vector<8x64xf32>
    %cst_7 = arith.constant 0.000000e+00 : f32
    %11 = vector.broadcast %cst_7 : f32 to vector<8x64xf32>
    %12 = arith.maximumf %10, %11 : vector<8x64xf32>
    %c0_8 = arith.constant 0 : index
    %c0_9 = arith.constant 0 : index
    %c0_10 = arith.constant 0 : index
    %13 = vector.load %arg5[%c0_8, %c0_9, %c0_10] : memref<1x72x4xf32, #tpu.memory_space<vmem>>, vector<1x64x4xf32>
    %14 = vector.shape_cast %13 : vector<1x64x4xf32> to vector<64x4xf32>
    %cst_11 = arith.constant dense<0.000000e+00> : vector<8x4xf32>
    %15 = tpu.matmul %12, %14, %cst_11 {dimension_numbers = #tpu.dot_dimension_numbers<[1], [0], [0], [1], [0, 0, 1, 1], [], []>} : vector<8x64xf32>, vector<64x4xf32>, vector<8x4xf32> -> vector<8x4xf32>
    %c0_12 = arith.constant 0 : index
    %c64_13 = arith.constant 64 : index
    %c0_14 = arith.constant 0 : index
    %16 = vector.load %arg5[%c0_12, %c64_13, %c0_14] : memref<1x72x4xf32, #tpu.memory_space<vmem>>, vector<1x1x4xf32>
    %17 = vector.shape_cast %16 : vector<1x1x4xf32> to vector<1x4xf32>
    %18 = vector.broadcast %17 : vector<1x4xf32> to vector<8x4xf32>
    %19 = arith.addf %15, %18 : vector<8x4xf32>
    %20 = tpu.iota {dimensions = array<i32: 1>} : vector<8x4xi32>
    %c2_i32 = arith.constant 2 : i32
    %21 = vector.broadcast %c2_i32 : i32 to vector<8x4xi32>
    %22 = arith.cmpi slt, %20, %21 : vector<8x4xi32>
    %cst_15 = arith.constant 5.000000e-01 : f32
    %23 = vector.broadcast %cst_15 : f32 to vector<8x4xf32>
    %24 = arith.mulf %23, %19 : vector<8x4xf32>
    %25 = math.exp %24 : vector<8x4xf32>
    %26 = arith.select %22, %19, %25 : vector<8x4xi1>, vector<8x4xf32>
    %c0_16 = arith.constant 0 : index
    %c0_17 = arith.constant 0 : index
    %c0_18 = arith.constant 0 : index
    %27 = vector.load %arg6[%c0_16, %c0_17, %c0_18] : memref<1x8x4xf32, #tpu.memory_space<vmem>>, vector<1x8x4xf32>
    %28 = vector.shape_cast %27 : vector<1x8x4xf32> to vector<8x4xf32>
    %29 = vector.shape_cast %26 : vector<8x4xf32> to vector<1x8x4xf32>
    tpu.vector_store %arg6[%c0_16, %c0_17, %c0_18], %29 {strides = array<i32>} : memref<1x8x4xf32, #tpu.memory_space<vmem>>, vector<1x8x4xf32>,
    return
  }
  func.func @transform_0(%arg0: i32, %arg1: memref<1xi32, #tpu.memory_space<smem>>) -> (i32, i32) {
    %c0_i32 = arith.constant 0 : i32
    %c0_i32_0 = arith.constant 0 : i32
    %c0_i32_1 = arith.constant 0 : i32
    return %c0_i32, %c0_i32_0 : i32, i32
  }
  func.func @transform_1(%arg0: i32, %arg1: memref<1xi32, #tpu.memory_space<smem>>) -> (i32, i32) {
    %c0_i32 = arith.constant 0 : i32
    %c0_i32_0 = arith.constant 0 : i32
    %c0_i32_1 = arith.constant 0 : i32
    return %c0_i32, %c0_i32_0 : i32, i32
  }
  func.func @transform_2(%arg0: i32, %arg1: memref<1xi32, #tpu.memory_space<smem>>) -> (i32, i32, i32) {
    %0 = arith.index_cast %arg0 : i32 to index
    %1 = memref.load %arg1[%0] : memref<1xi32, #tpu.memory_space<smem>>
    %c0_i32 = arith.constant 0 : i32
    %c0_i32_0 = arith.constant 0 : i32
    %c0_i32_1 = arith.constant 0 : i32
    return %1, %c0_i32, %c0_i32_0 : i32, i32, i32
  }
  func.func @transform_3(%arg0: i32, %arg1: memref<1xi32, #tpu.memory_space<smem>>) -> (i32, i32, i32) {
    %0 = arith.index_cast %arg0 : i32 to index
    %1 = memref.load %arg1[%0] : memref<1xi32, #tpu.memory_space<smem>>
    %c0_i32 = arith.constant 0 : i32
    %c0_i32_0 = arith.constant 0 : i32
    %c0_i32_1 = arith.constant 0 : i32
    return %1, %c0_i32, %c0_i32_0 : i32, i32, i32
  }
  func.func @transform_4(%arg0: i32, %arg1: memref<1xi32, #tpu.memory_space<smem>>) -> (i32, i32, i32) {
    %c0_i32 = arith.constant 0 : i32
    %c0_i32_0 = arith.constant 0 : i32
    %c0_i32_1 = arith.constant 0 : i32
    return %arg0, %c0_i32, %c0_i32_0 : i32, i32, i32
  }
}

</mosaic_0001>

<bundles_post_ra>
// kernel: tpu_custom_call.1
= control target key start
LH: loop header
LB: loop body
LE: loop exit
PB: predicated region body
PF: predicated region fallthrough
CT: control target
= control target key end

     0   :  { %vm74_vm0 = vcmask 1041408   ;;  %vm70_vm1 = vcmask 15360   ;;  %v582_v0 = vmov 0.0   ;;  %vm583_vm2 = vmmov 0   ;;  %s715_s2 = inlined_call_operand.vmem [shape: f32[88,64], index: 2, kind: input, shape index: {}]   ;;  %s716_s1 = inlined_call_operand.vmem [shape: f32[8,2], index: 1, kind: input, shape index: {}]   ;;  %s717_s0 = inlined_call_operand.<no memory space> [shape: s32[1], index: 0, kind: input, shape index: {}]   ;;  %s718_s3 = inlined_call_operand.vmem [shape: f32[40,72,64], index: 3, kind: input, shape index: {}]   ;;  %s719_s4 = inlined_call_operand.vmem [shape: f32[40,72,4], index: 4, kind: input, shape index: {}]   ;;  %s720_s5 = inlined_call_operand.vmem [shape: f32[1,8,4], index: 5, kind: output, shape index: {}]  }
   0x1   :  { %478 = vmatprep.subr.mxu0 %v582_v0  ;;  %v64_v1 = vld [vmem:[%s715_s2] sm:$0x3]  ;;  %480 = vmatprep.mubr.msk.f32.mxu0 %vm583_vm2, %v582_v0  ;;  %v149_v3 = vld [vmem:[%s715_s2 + $0x10] sm:$0xff]  ;;  %v584_v4 = vmov 0.0|0.0   ;;  %v150_v5 = vld [vmem:[%s715_s2 + $0x18] sm:$0xff]  ;;  %p46_p0 = scmp.lt.s32.totalorder %s717_s0, 39  ;;  %v413_v62 = vlaneseq }
   0x2   :  { %v63_v2 = vld [vmem:[%s716_s1] sm:$0xff]  ;;  %479 = vmatpush3.msk.msra.mxu0 %vm74_vm0, %v64_v1  ;;  %540 = vmatprep.subr.bf16.mxu1 %v584_v4  ;;  %v152_v7 = vld [vmem:[%s715_s2 + $0x28] sm:$0xff]  ;;  %v541_v8 = vpack.c.bf16 %v150_v5, %v149_v3  ;;  %v153_v10 = vld [vmem:[%s715_s2 + $0x30] sm:$0xff]  ;;  %vm162_vm3 = vcmask 523264   ;;  %vm420_vm5 = vcmask 31744  }
   0x3   :  { %v151_v6 = vld [vmem:[%s715_s2 + $0x20] sm:$0xff]  ;;  %481 = vmatmul.mubr.msk.f32.vlgmr.msra.gmra.mrb[0].mxu0 %vm70_vm1, %v63_v2  ;;  %499 = vmatprep.mubr.msk.f32.mxu1 %vm583_vm2, %v582_v0  ;;  %v154_v11 = vld [vmem:[%s715_s2 + $0x38] sm:$0xff]  ;;  %v156_v14 = vld [vmem:[%s715_s2 + $0x48] sm:$0xff]  ;;  %s722_s0 = smov (!%p46_p0, %s717_s0), 39  ;;  %v414_v63 = vand.u32 127, %v413_v62 }
   0x4   :  { %552 = vmatprep.subr.bf16.mxu0 %v584_v4  ;;  %518 = vmatprep.mubr.msk.f32.mxu0 %vm583_vm2, %v582_v0  ;;  %v544_v9 = vpack.c.bf16 %v152_v7, %v151_v6  ;;  %v547_v12 = vpack.c.bf16 %v154_v11, %v153_v10  ;;  %v155_v13 = vld [vmem:[%s715_s2 + $0x40] sm:$0xff]  ;;  %s576_s16 = smul.u32 72, %s722_s0  ;;  %v440_v19 = vld [vmem:[%s715_s2 + $0x8] ss:$0 sm:$0xff]  ;;  %v443_v42 = vld [vmem:[%s715_s2 + $0x50] ss:$0 sm:$0xff] }
   0x5   :  { %542 = vmatpush3.bf16.msra.mxu1 %v541_v8  ;;  %v550_v15 = vpack.c.bf16 %v156_v14, %v155_v13  ;;  %vm415_vm4 = vcmp.lt.s32.totalorder %v414_v63, 2 }
   0x6   :  { %543 = vmatprep.subr.bf16.mxu1 %v584_v4  ;;  %s668_s19 = scalar_lea.vmem %s718_s3, %s576_s16  ;;  %s691_s23 = scalar_lea.vmem %s719_s4, %s576_s16 }
   0x7   :  { %v239_v16 = vld [vmem:[%s668_s19] sm:$0xff]  ;;  %v240_v17 = vld [vmem:[%s668_s19 + $0x8] sm:$0xff]  ;;  %v241_v24 = vld [vmem:[%s668_s19 + $0x10] sm:$0xff] }
   0x8   :  { %v553_v18 = vpack.c.bf16 %v240_v17, %v239_v16  ;;  %v242_v25 = vld [vmem:[%s668_s19 + $0x18] sm:$0xff]  ;;  %v243_v27 = vld [vmem:[%s668_s19 + $0x20] sm:$0xff]  ;;  %v244_v28 = vld [vmem:[%s668_s19 + $0x28] sm:$0xff] }
   0x9   :  { %545 = vmatpush3.bf16.msra.mxu1 %v544_v9  ;;  %v556_v26 = vpack.c.bf16 %v242_v25, %v241_v24  ;;  %v559_v29 = vpack.c.bf16 %v244_v28, %v243_v27  ;;  %v245_v30 = vld [vmem:[%s668_s19 + $0x30] sm:$0xff]  ;;  %v246_v31 = vld [vmem:[%s668_s19 + $0x38] sm:$0xff]  ;;  %v327_v33 = vld [vmem:[%s691_s23] sm:$0xff] }
   0xa   :  { %546 = vmatprep.subr.bf16.mxu1 %v584_v4  ;;  %554 = vmatpush3.bf16.msra.mxu0 %v553_v18  ;;  %v562_v32 = vpack.c.bf16 %v246_v31, %v245_v30  ;;  %v328_v34 = vld [vmem:[%s691_s23 + $0x8] sm:$0xff]  ;;  %v329_v35 = vld [vmem:[%s691_s23 + $0x10] sm:$0xff]  ;;  %v330_v37 = vld [vmem:[%s691_s23 + $0x18] sm:$0xff] }
   0xb   :  { %555 = vmatprep.subr.bf16.mxu0 %v584_v4  ;;  %v565_v36 = vpack.c.bf16 %v328_v34, %v327_v33  ;;  %v568_v38 = vpack.c.bf16 %v330_v37, %v329_v35  ;;  %v331_v39 = vld [vmem:[%s691_s23 + $0x20] sm:$0xff]  ;;  %v332_v40 = vld [vmem:[%s691_s23 + $0x28] sm:$0xff]  ;;  %v333_v48 = vld [vmem:[%s691_s23 + $0x30] sm:$0xff] }
   0xc   :  { %v571_v41 = vpack.c.bf16 %v332_v40, %v331_v39  ;;  %v334_v49 = vld [vmem:[%s691_s23 + $0x38] sm:$0xff]  ;;  %v445_v51 = vld [vmem:[%s668_s19 + $0x40] ss:$0 sm:$0xff] }
   0xd   :  { %548 = vmatpush3.bf16.msra.mxu1 %v547_v12  ;;  %v574_v50 = vpack.c.bf16 %v334_v49, %v333_v48  ;;  %v447_v56 = vld [vmem:[%s691_s23 + $0x40] ss:$0 sm:$0xff] }
   0xe   :  { %549 = vmatprep.subr.bf16.mxu1 %v584_v4  ;;  %557 = vmatpush3.bf16.msra.mxu0 %v556_v26 }
   0xf   :  { %558 = vmatprep.subr.bf16.mxu0 %v584_v4 }
  0x11   :  { %551 = vmatpush3.bf16.msra.mxu1 %v550_v15 }
  0x12   :  { %564 = vmatprep.subr.bf16.mxu1 %v584_v4  ;;  %560 = vmatpush3.bf16.msra.mxu0 %v559_v29 }
  0x13   :  { %561 = vmatprep.subr.bf16.mxu0 %v584_v4 }
  0x16   :  { %563 = vmatpush3.bf16.msra.mxu0 %v562_v32 }
  0xd6   :  { %v144_v20 = vpop.f32.mrb[0].mxu0 }
  0xd7   :  { %v145_v21 = vadd.f32 %v440_v19, %v144_v20  ;;  %v482_v22 = vpop.f32.mrb[1].mxu0 }
  0xd9   :  { %v148_v23 = vmax.f32 %v145_v21, 0.0 }
  0xdb   :  { %500 = vmatmul.mubr.msk.f32.vlgmr.msra.gmra.mrb[0].mxu1 %vm162_vm3, %v148_v23 }
  0xdc   :  { %537 = vmatprep.mubr.msk.f32.mxu1 %vm583_vm2, %v582_v0  ;;  %566 = vmatpush3.bf16.msra.mxu1 %v565_v36 }
  0xdd   :  { %567 = vmatprep.subr.bf16.mxu1 %v584_v4 }
  0xe0   :  { %569 = vmatpush3.bf16.msra.mxu1 %v568_v38 }
  0xe1   :  { %570 = vmatprep.subr.bf16.mxu1 %v584_v4 }
  0xe4   :  { %572 = vmatpush3.bf16.msra.mxu1 %v571_v41 }
  0xe5   :  { %573 = vmatprep.subr.bf16.mxu1 %v584_v4 }
  0xe8   :  { %575 = vmatpush3.bf16.msra.mxu1 %v574_v50 }
 0x1ae   :  { %v232_v43 = vpop.f32.mrb[0].mxu1 }
 0x1af   :  { %v233_v44 = vadd.f32 %v443_v42, %v232_v43  ;;  %v501_v45 = vpop.f32.mrb[1].mxu1 }
 0x1b1   :  { %v236_v46 = vmax.f32 %v233_v44, 0.0 }
 0x1b3   :  { %237 = vst.msk [vmem:[#allocation2] sm:$0xff] %vm162_vm3, %v236_v46 }
 0x1ba   :  { %v238_v47 = vld [vmem:[#allocation2] sm:$0xff] }
 0x1bb   :  { %519 = vmatmul.mubr.msk.f32.vlgmr.msra.gmra.mrb[2].mxu0 %vm162_vm3, %v238_v47 }
 0x28e   :  { %v322_v52 = vpop.f32.mrb[2].mxu0 }
 0x28f   :  { %v323_v53 = vadd.f32 %v445_v51, %v322_v52  ;;  %v520_v54 = vpop.f32.mrb[3].mxu0 }
 0x291   :  { %v326_v55 = vmax.f32 %v323_v53, 0.0 }
 0x293   :  { %538 = vmatmul.mubr.msk.f32.vlgmr.msra.gmra.mrb[2].mxu1 %vm162_vm3, %v326_v55 }
 0x366   :  { %v409_v57 = vpop.f32.mrb[2].mxu1 }
 0x367   :  { %v410_v58 = vadd.f32 %v447_v56, %v409_v57  ;;  %v539_v59 = vpop.f32.mrb[3].mxu1 }
 0x369   :  { %v416_v60 = vmul.f32 0.5, %v410_v58 }
 0x36b   :  { %v417_v61 = vmul.f32 1.442695, %v416_v60 }
 0x36d   :  { %580 = vpow2.f32 %v417_v61 }
 0x377   :  { %v581_v0 = vpop.eup %580 }
 0x378   :  { %v419_v1 = vsel %vm415_vm4, %v410_v58, %v581_v0 }
 0x379   :  { %421 = vst.msk [vmem:[%s720_s5] sm:$0xff] %vm420_vm5, %v419_v1 }

</bundles_post_ra>
